<compile_context>
chip_gen: v5e
topology: v5e:2x2
jax: 0.10.0
libtpu: 0.0.40
codegen_flags: <defaults>
</compile_context>

<pallas_src>
import jax
import jax.numpy as jnp
from jax.experimental import pallas as pl
from jax.experimental.pallas import tpu as pltpu


def _approx_mrr_kernel(input_ref, target_ref, masks_ref, loss_ref):
    x = input_ref[...].astype(jnp.float32)   # [TB, L] ranking scores
    t = target_ref[...].astype(jnp.float32)  # [TB, L] relevance labels
    m = masks_ref[...].astype(jnp.float32)   # [TB, L] 0/1 validity mask

    # target = target * masks
    t = t * m
    # input = input + (1 - masks) * (min(input, -1, keepdim) - 1000)
    # (min is over ALL entries incl. masked ones, exactly like the reference)
    xmin = jnp.min(x, axis=-1, keepdims=True)
    x = x + (1.0 - m) * (xmin - 1000.0)

    # rr  = sum(input * target, -1, keepdim);  mrr = rr / sum(target, -1, keepdim)
    num = jnp.sum(x * t, axis=-1, keepdims=True)   # [TB, 1]
    den = jnp.sum(t, axis=-1, keepdims=True)       # [TB, 1]

    # loss = -mrr   (unguarded divide, same as the PyTorch module)
    loss_ref[...] = -(num / den)


def _pick_tile_b(B, L, vmem_budget_bytes=8 << 20):
    """Largest batch tile that keeps double-buffered inputs under budget."""
    per_row_bytes = 3 * L * 4 * 2          # 3 f32 inputs, double-buffered
    cap = max(8, vmem_budget_bytes // per_row_bytes)
    if B <= cap:
        return B                           # whole batch in one grid step
    best = B
    for tb in range(8, int(cap) + 1, 8):   # sublane-aligned divisors of B
        if B % tb == 0:
            best = tb
    return best


def approx_mrr_loss(inputs, target, masks, sample_weight=None,
                    reduction="mean", alpha=10.0, tile_b=None):
    # `alpha` only parameterizes the dead approx_ranks term in the reference
    # forward; it has no effect on the output value.
    B, L = inputs.shape
    if tile_b is None:
        tile_b = _pick_tile_b(B, L)
    assert tile_b == B or (B % tile_b == 0 and tile_b % 8 == 0)
    grid = (B // tile_b,)

    cost = pl.CostEstimate(
        flops=7 * B * L,
        transcendentals=0,
        bytes_accessed=3 * B * L * 4 + B * 4,
    )

    per_list = pl.pallas_call(
        _approx_mrr_kernel,
        out_shape=jax.ShapeDtypeStruct((B, 1), jnp.float32),
        grid_spec=pltpu.PrefetchScalarGridSpec(
            num_scalar_prefetch=0,
            grid=grid,
            in_specs=[
                pl.BlockSpec((tile_b, L), lambda b: (b, 0)),
                pl.BlockSpec((tile_b, L), lambda b: (b, 0)),
                pl.BlockSpec((tile_b, L), lambda b: (b, 0)),
            ],
            out_specs=pl.BlockSpec((tile_b, 1), lambda b: (b, 0)),
        ),
        compiler_params=pltpu.CompilerParams(
            dimension_semantics=("parallel",)),
        cost_estimate=cost,
    )(inputs.astype(jnp.float32),
      target.astype(jnp.float32),
      masks.astype(jnp.float32))

    loss = per_list                        # [B, 1], matches torch loss shape
    if sample_weight is not None:
        loss = loss * sample_weight        # same broadcasting as the module
    if reduction == "mean":
        loss = jnp.mean(loss)
    return loss


def _reference_loss(x, t, m, alpha=10.0, reduction="mean"):
    """Literal pure-JAX transcription of ApproxMRRLoss.forward (verification)."""
    t = t * m
    x = x + (1.0 - m) * (jnp.min(x, -1, keepdims=True) - 1000.0)
    pairs = jax.nn.sigmoid(alpha * (x[:, None, :] - x[:, :, None]))
    rr = 1.0 / (jnp.sum(pairs, -1) + 0.5)      # overwritten below, as in the module
    rr = jnp.sum(x * t, -1, keepdims=True)
    mrr = rr / jnp.sum(t, -1, keepdims=True)
    loss = -mrr
    if reduction == "mean":
        loss = jnp.mean(loss)
    return loss


if __name__ == "__main__":
    key = jax.random.PRNGKey(0)
    B, L = 8, 128
    k1, k2, k3 = jax.random.split(key, 3)

    inputs = jax.random.normal(k1, (B, L), dtype=jnp.float32)
    # graded relevance labels in {0,1,2,3,4}
    target = jax.random.randint(k2, (B, L), 0, 5).astype(jnp.float32)
    # valid-length masks (at least half the list valid per row)
    lengths = jax.random.randint(k3, (B, 1), L // 2, L + 1)
    masks = (jnp.arange(L)[None, :] < lengths).astype(jnp.float32)
    # guarantee each row has at least one positive relevance so the module's
    # unguarded divide-by-sum(target) stays finite
    target = target.at[:, 0].set(jnp.maximum(target[:, 0], 1.0))

    loss = approx_mrr_loss(inputs, target, masks, reduction="mean", alpha=10.0)
    loss = jax.block_until_ready(loss)

    ref = jax.block_until_ready(
        _reference_loss(inputs, target, masks, alpha=10.0))
    assert jnp.allclose(loss, ref, rtol=1e-5, atol=1e-5), (loss, ref)

    print("KERNEL_OK")
</pallas_src>

<mosaic_0001>
module attributes {stable_mosaic.version = 11 : i64} {
  func.func @_approx_mrr_kernel(%arg0: i32, %arg1: memref<8x128xf32, #tpu.memory_space<vmem>>, %arg2: memref<8x128xf32, #tpu.memory_space<vmem>>, %arg3: memref<8x128xf32, #tpu.memory_space<vmem>>, %arg4: memref<8x1xf32, #tpu.memory_space<vmem>>) attributes {dimension_semantics = [#tpu.dimension_semantics<parallel>], iteration_bounds = array<i64: 1>, scalar_prefetch = 0 : i64, scratch_operands = 0 : i64, tpu.core_type = #tpu.core_type<tc>, window_params = [{transform_indices = @transform_0, window_bounds = array<i64: 8, 128>}, {transform_indices = @transform_1, window_bounds = array<i64: 8, 128>}, {transform_indices = @transform_2, window_bounds = array<i64: 8, 128>}, {transform_indices = @transform_3, window_bounds = array<i64: 8, 1>}]} {
    %c0 = arith.constant 0 : index
    %c0_0 = arith.constant 0 : index
    %0 = vector.load %arg1[%c0, %c0_0] : memref<8x128xf32, #tpu.memory_space<vmem>>, vector<8x128xf32>
    %c0_1 = arith.constant 0 : index
    %c0_2 = arith.constant 0 : index
    %1 = vector.load %arg2[%c0_1, %c0_2] : memref<8x128xf32, #tpu.memory_space<vmem>>, vector<8x128xf32>
    %c0_3 = arith.constant 0 : index
    %c0_4 = arith.constant 0 : index
    %2 = vector.load %arg3[%c0_3, %c0_4] : memref<8x128xf32, #tpu.memory_space<vmem>>, vector<8x128xf32>
    %3 = arith.mulf %1, %2 : vector<8x128xf32>
    %cst = arith.constant dense<0x7F800000> : vector<8xf32>
    %4 = vector.multi_reduction <minimumf>, %0, %cst [1] : vector<8x128xf32> to vector<8xf32>
    %5 = vector.shape_cast %4 : vector<8xf32> to vector<8x1xf32>
    %cst_5 = arith.constant 1.000000e+00 : f32
    %6 = vector.broadcast %cst_5 : f32 to vector<8x128xf32>
    %7 = arith.subf %6, %2 : vector<8x128xf32>
    %cst_6 = arith.constant 1.000000e+03 : f32
    %8 = vector.broadcast %cst_6 : f32 to vector<8x1xf32>
    %9 = arith.subf %5, %8 : vector<8x1xf32>
    %10 = vector.broadcast %9 : vector<8x1xf32> to vector<8x128xf32>
    %11 = arith.mulf %7, %10 : vector<8x128xf32>
    %12 = arith.addf %0, %11 : vector<8x128xf32>
    %13 = arith.mulf %12, %3 : vector<8x128xf32>
    %cst_7 = arith.constant dense<0.000000e+00> : vector<8xf32>
    %14 = vector.multi_reduction <add>, %13, %cst_7 [1] : vector<8x128xf32> to vector<8xf32>
    %15 = vector.shape_cast %14 : vector<8xf32> to vector<8x1xf32>
    %cst_8 = arith.constant dense<0.000000e+00> : vector<8xf32>
    %16 = vector.multi_reduction <add>, %3, %cst_8 [1] : vector<8x128xf32> to vector<8xf32>
    %17 = vector.shape_cast %16 : vector<8xf32> to vector<8x1xf32>
    %18 = arith.divf %15, %17 : vector<8x1xf32>
    %cst_9 = arith.constant 0.000000e+00 : f32
    %19 = vector.broadcast %cst_9 : f32 to vector<8x1xf32>
    %20 = arith.subf %19, %18 : vector<8x1xf32>
    %c0_10 = arith.constant 0 : index
    %c0_11 = arith.constant 0 : index
    %21 = vector.load %arg4[%c0_10, %c0_11] : memref<8x1xf32, #tpu.memory_space<vmem>>, vector<8x1xf32>
    tpu.vector_store %arg4[%c0_10, %c0_11], %20 {strides = array<i32>} : memref<8x1xf32, #tpu.memory_space<vmem>>, vector<8x1xf32>,
    return
  }
  func.func @transform_0(%arg0: i32) -> (i32, i32) {
    %c0_i32 = arith.constant 0 : i32
    %c0_i32_0 = arith.constant 0 : i32
    return %arg0, %c0_i32 : i32, i32
  }
  func.func @transform_1(%arg0: i32) -> (i32, i32) {
    %c0_i32 = arith.constant 0 : i32
    %c0_i32_0 = arith.constant 0 : i32
    return %arg0, %c0_i32 : i32, i32
  }
  func.func @transform_2(%arg0: i32) -> (i32, i32) {
    %c0_i32 = arith.constant 0 : i32
    %c0_i32_0 = arith.constant 0 : i32
    return %arg0, %c0_i32 : i32, i32
  }
  func.func @transform_3(%arg0: i32) -> (i32, i32) {
    %c0_i32 = arith.constant 0 : i32
    %c0_i32_0 = arith.constant 0 : i32
    return %arg0, %c0_i32 : i32, i32
  }
}

</mosaic_0001>

<bundles_post_ra>
// kernel: tpu_custom_call.1
= control target key start
LH: loop header
LB: loop body
LE: loop exit
PB: predicated region body
PF: predicated region fallthrough
CT: control target
= control target key end

     0   :  { %8 = vsyncpa [#allocation3], 0  ;;  %s211_s0 = inlined_call_operand.hbm [shape: f32[8,128], index: 0, kind: input, shape index: {}]   ;;  %s212_s1 = inlined_call_operand.hbm [shape: f32[8,128], index: 1, kind: input, shape index: {}]   ;;  %s213_s2 = inlined_call_operand.hbm [shape: f32[8,128], index: 2, kind: input, shape index: {}]   ;;  %s214_s3 = inlined_call_operand.vmem [shape: f32[8,1], index: 3, kind: output, shape index: {}]  }
   0x1   :  { %9 = vsyncpa [#allocation5], 0  ;;  %s26_s14 = sshll.u32 %s212_s1, 4  ;;  %s176_s15 = smov [#allocation4]   ;;  %s27_s14 = int_to_ptr.hbm [resolvable:$true] %s26_s14 }
   0x2   :  { %s28_s16 = sshll.u32 %s176_s15, 4  ;;  %s15_s19 = sshll.u32 %s211_s0, 4  ;;  %s29_s16 = int_to_ptr.vmem [resolvable:$true] %s28_s16  ;;  %s16_s19 = int_to_ptr.hbm [resolvable:$true] %s15_s19 }
   0x3   :  { %31 = dma.hbm_to_vmem [thread:$0]  %s27_s14, 128, %s29_s16, [#allocation5]  }
   0x4   :  { %s177_s20 = smov [#allocation2]   ;;  %s37_s24 = sshll.u32 %s213_s2, 4  ;;  %s38_s24 = int_to_ptr.hbm [resolvable:$true] %s37_s24 }
   0x5   :  { %s17_s21 = sshll.u32 %s177_s20, 4  ;;  %s178_s1 = smov [#allocation6]   ;;  %s18_s21 = int_to_ptr.vmem [resolvable:$true] %s17_s21 }
   0x6   :  { %20 = dma.hbm_to_vmem [thread:$0]  %s16_s19, 128, %s18_s21, [#allocation3]  }
   0x7   :  { %s39_s25 = sshll.u32 %s178_s1, 4  ;;  %s40_s25 = int_to_ptr.vmem [resolvable:$true] %s39_s25 }
   0x8   :  { %42 = dma.hbm_to_vmem [thread:$0]  %s38_s24, 128, %s40_s25, [#allocation5]  }
   0x9   :  { %172 = dma.done.wait [#allocation3], 128  }
   0xa   :  { %173 = vsyncadd [#allocation3], 4294967168 }
   0xb   :  { %174 = dma.done.wait [#allocation5], 256  }
   0xc   :  { %175 = vsyncadd [#allocation5], 4294967040  ;;  %v55_v0 = vld [vmem:[#allocation2] sm:$0xff]  ;;  %v56_v1 = vld [vmem:[#allocation4] sm:$0xff]  ;;  %vm86_vm4 = vcmask 7168  }
   0xd   :  { %59 = vmin.xlane.f32.xlu0 %v55_v0  ;;  %v57_v2 = vld [vmem:[#allocation6] sm:$0xff] }
   0xe   :  { %v58_v3 = vmul.f32 %v57_v2, %v56_v1  ;;  %v61_v4 = vsub.f32 1.0, %v57_v2 }
  0x15   :  { %68 = vadd.xlane.f32.xlu0 %v58_v3 }
  0x80   :  { %v60_v5 = vpop.xlane.xlu0 %59 }
  0x81   :  { %v94_v6 = vadd.f32 -1000.0, %v60_v5 }
  0x83   :  { %v63_v7 = vmul.f32 %v94_v6, %v61_v4 }
  0x85   :  { %v64_v8 = vadd.f32 %v63_v7, %v55_v0 }
  0x87   :  { %v65_v9 = vmul.f32 %v64_v8, %v58_v3 }
  0x88   :  { %v69_v10 = vpop.xlane.xlu0 %68 }
  0x89   :  { %66 = vadd.xlane.f32.xlu1 %v65_v9  ;;  %98 = vrcp.f32 %v69_v10  ;;  %vm75_vm0 = vweird.f32 %v69_v10  ;;  %v81_v15 = vand.u32 2147483648, %v69_v10  ;;  %v79_v17 = vand.u32 2147483647, %v69_v10 }
  0x8b   :  { %v82_v18 = vor.u32 1.1754944e-38, %v81_v15  ;;  %vm80_vm3 = vcmp.eq.f32.partialorder %v79_v17, 8.507059e+37 }
  0x8f   :  { %v99_v11 = vpop.eup %98 }
  0x90   :  { %v71_v12 = vmul.f32 %v99_v11, %v69_v10  ;;  %vm76_vm1 = vweird.f32 %v99_v11 }
  0x91   :  { %vm77_vm2 = vmor %vm75_vm0, %vm76_vm1 }
  0x92   :  { %v72_v13 = vsub.f32 1.0, %v71_v12 }
  0x94   :  { %v73_v14 = vmul.f32 %v99_v11, %v72_v13 }
  0x96   :  { %v74_v16 = vadd.f32 %v99_v11, %v73_v14 }
  0x98   :  { %v78_v19 = vsel %vm77_vm2, %v99_v11, %v74_v16 }
  0x99   :  { %v83_v21 = vsel %vm80_vm3, %v82_v18, %v78_v19 }
  0xfc   :  { %v67_v20 = vpop.xlane.xlu1 %66 }
  0xfd   :  { %v84_v22 = vmul.f32 %v83_v21, %v67_v20 }
  0xff   :  { %v85_v23 = vsub.f32 0.0, %v84_v22 }
 0x101   :  { %87 = vst.msk [vmem:[%s214_s3] sm:$0xff] %vm86_vm4, %v85_v23 }
 0x102   :  { %92 = vsyncpa [#allocation3], 1 }
 0x103   :  { %93 = vsyncpa [#allocation5], 1 }

</bundles_post_ra>
